<compile_context>
chip_gen: v5e
topology: v5e:2x2
jax: 0.10.0
libtpu: 0.0.40
codegen_flags: <defaults>
</compile_context>

<pallas_src>
import functools

import jax
import jax.numpy as jnp
from jax.experimental import pallas as pl
from jax.experimental.pallas import tpu as pltpu

# Layer widths of FeedForwardPart: in_channels -> 256 -> 128 -> ... -> 1
HIDDEN_SIZES = [256, 128, 64, 32, 16, 8, 4, 2, 1]


def _round_up(a, b):
    return ((a + b - 1) // b) * b


def _ffn_kernel(x_ref, w_ref, o_ref):
    """One packed row-tile of the folded feed-forward chain.

    x_ref: (tm_p, packed_width)  lane-dense packed input rows
    w_ref: (packed_width, pack)  block-diagonal folded weight (resident)
    o_ref: (tm_p, pack)          per-packed-row outputs
    """
    # Natural MXU orientation: big operand is the LHS, contraction on its last
    # dim -> no XLU transpose of the large tile.
    o_ref[...] = jnp.dot(
        x_ref[...], w_ref[...], preferred_element_type=jnp.float32
    ).astype(o_ref.dtype)


def fold_weights(weights_t):
    """Fold the bias-free, activation-free 9-layer chain into one (C_in, 1) weight.

    weights_t[i] has shape (in_i, out_i) (the transpose of torch's (out, in)).
    Call once and reuse: weights are static across forward calls.
    """
    w_eff = weights_t[-1]
    for w in reversed(weights_t[:-1]):
        w_eff = jnp.dot(w, w_eff)  # stays a skinny (in_i, 1) mat-vec
    return w_eff  # (C_in, 1)


@functools.partial(jax.jit, static_argnames=("tm_rows", "small_cutoff"))
def feed_forward_part(x, w_eff, *, tm_rows=None, small_cutoff=4096):
    """Apply the FeedForwardPart forward pass.

    Args:
      x:      (M, C_in) float32 array (feature dim last, as in nn.Linear).
      w_eff:  (C_in, 1) folded weight from fold_weights().
      tm_rows:     optional packed-row tile override (rounded to 128).
      small_cutoff: below this many rows, use a plain XLA dot (kernel launch
                    overhead dominates for KB-sized inputs).
    Returns:
      (M, 1) float32 array.
    """
    M, c_in = x.shape
    assert w_eff.shape == (c_in, 1)

    # Tiny inputs: Pallas launch overhead dominates; XLA's fused dot wins.
    if M <= small_cutoff:
        return jnp.dot(x, w_eff)

    # Lane-pack narrow feature dims so the DMA destination / VMEM / vregs are
    # lane-dense (C_in=16 would otherwise waste 8x of every loaded vreg).
    if c_in < 128 and 128 % c_in == 0:
        pack = 128 // c_in
    else:
        pack = 1  # generic fallback: accept lane padding for odd / wide C_in
    packed_width = pack * c_in
    m_packed, m_rem = divmod(M, pack)
    m_main = m_packed * pack

    if m_packed == 0:
        return jnp.dot(x, w_eff)

    # Block-diagonal selector: with x reshaped (m_packed, pack*C) row-major,
    # (x_packed @ w_sel)[r, k] = sum_j x[r*pack + k, j] * w_eff[j].
    w_sel = jnp.kron(jnp.eye(pack, dtype=w_eff.dtype), w_eff)  # (pack*C, pack)
    x_packed = x[:m_main].reshape(m_packed, packed_width)      # free, contiguous

    # Row-tile size: target ~4 MiB input block (~85-90% of HBM roofline per
    # measured BlockSpec scaling), multiple of 128 packed rows.
    lane_w = _round_up(packed_width, 128)       # lane-padded width in VMEM
    if tm_rows is None:
        tm_p = max(128, ((4 * 1024 * 1024) // (lane_w * 4)) // 128 * 128)
    else:
        tm_p = max(128, (tm_rows // 128) * 128)
    if m_packed <= tm_p:
        tm_p = m_packed  # single block == full array: always layout-legal
    num_tiles = pl.cdiv(m_packed, tm_p)

    # VMEM budget: double-buffered (input + lane-padded output) blocks +
    # resident weight + margin. Stays well under 64 MiB even on v7x.
    out_lane_w = _round_up(pack, 128)
    vmem_need = (2 * tm_p * (lane_w + out_lane_w) * 4
                 + lane_w * out_lane_w * 4 + (2 << 20))
    vmem_limit = min(max(vmem_need, 32 * 1024 * 1024), 100 * 1024 * 1024)

    out = pl.pallas_call(
        _ffn_kernel,
        out_shape=jax.ShapeDtypeStruct((m_packed, pack), jnp.float32),
        grid_spec=pltpu.PrefetchScalarGridSpec(
            num_scalar_prefetch=0,
            grid=(num_tiles,),
            in_specs=[
                # (tm_p, packed_width) lane-dense row tile of packed x.
                pl.BlockSpec((tm_p, packed_width), lambda i: (i, 0)),
                # Folded block-diagonal weight; whole array, resident.
                pl.BlockSpec((packed_width, pack), lambda i: (0, 0)),
            ],
            # Ragged last block is masked on writeback; no jnp.pad needed
            # because each output row depends only on its own input row.
            out_specs=pl.BlockSpec((tm_p, pack), lambda i: (i, 0)),
        ),
        compiler_params=pltpu.CompilerParams(
            dimension_semantics=("parallel",),
            vmem_limit_bytes=vmem_limit,
        ),
    )(x_packed, w_sel)

    y = out.reshape(m_main, 1)
    if m_rem:
        # Leftover (< pack) rows: trivial XLA dot, no full-array pad/copy.
        y = jnp.concatenate([y, jnp.dot(x[m_main:], w_eff)], axis=0)
    return y


def init_weights(key, in_channels):
    """Deterministic init mimicking torch.nn.Linear (uniform +-1/sqrt(fan_in)).

    Returns weights already transposed to (in, out).
    """
    sizes = [in_channels] + HIDDEN_SIZES
    weights_t = []
    for idx in range(len(HIDDEN_SIZES)):
        key, sub = jax.random.split(key)
        fan_in, fan_out = sizes[idx], sizes[idx + 1]
        bound = 1.0 / jnp.sqrt(jnp.float32(fan_in))
        w_t = jax.random.uniform(
            sub, (fan_in, fan_out), dtype=jnp.float32,
            minval=-bound, maxval=bound,
        )
        weights_t.append(w_t)
    return weights_t


def reference(x, weights_t):
    """Unfolded pure-JAX reference matching the PyTorch module layer-by-layer."""
    h = x
    for w in weights_t:
        h = h @ w
    return h


if __name__ == "__main__":
    key = jax.random.PRNGKey(0)
    in_channels = 16
    # M deliberately not a multiple of pack(=8) or the tile: exercises the
    # packing remainder path and the ragged last block, with zero padding copies.
    M = 300

    kx, kw = jax.random.split(key)
    x = jax.random.normal(kx, (M, in_channels), dtype=jnp.float32)
    weights_t = init_weights(kw, in_channels)

    # Fold the 9-layer chain once (weights are static across calls) and reuse.
    w_eff = jax.block_until_ready(fold_weights(weights_t))

    # small_cutoff=0 forces the Pallas path so the kernel itself is exercised
    # at this tiny test size (the production default routes tiny M to XLA).
    out = feed_forward_part(x, w_eff, small_cutoff=0)
    out = jax.block_until_ready(out)

    ref = reference(x, weights_t)
    assert out.shape == (M, 1)
    assert jnp.allclose(out, ref, atol=1e-4, rtol=1e-4), "mismatch vs reference"

    print("KERNEL_OK")
</pallas_src>

<mosaic_0001>
module attributes {stable_mosaic.version = 11 : i64} {
  func.func @_ffn_kernel(%arg0: i32, %arg1: memref<37x128xf32, #tpu.memory_space<vmem>>, %arg2: memref<128x8xf32, #tpu.memory_space<vmem>>, %arg3: memref<37x8xf32, #tpu.memory_space<vmem>>) attributes {dimension_semantics = [#tpu.dimension_semantics<parallel>], iteration_bounds = array<i64: 1>, scalar_prefetch = 0 : i64, scratch_operands = 0 : i64, tpu.core_type = #tpu.core_type<tc>, window_params = [{transform_indices = @transform_0, window_bounds = array<i64: 37, 128>}, {pipeline_mode = #tpu.pipeline_mode<synchronous>, transform_indices = @transform_1, window_bounds = array<i64: 128, 8>}, {transform_indices = @transform_2, window_bounds = array<i64: 37, 8>}]} {
    %c0 = arith.constant 0 : index
    %c0_0 = arith.constant 0 : index
    %0 = vector.load %arg1[%c0, %c0_0] : memref<37x128xf32, #tpu.memory_space<vmem>>, vector<37x128xf32>
    %c0_1 = arith.constant 0 : index
    %c0_2 = arith.constant 0 : index
    %1 = vector.load %arg2[%c0_1, %c0_2] : memref<128x8xf32, #tpu.memory_space<vmem>>, vector<128x8xf32>
    %cst = arith.constant dense<0.000000e+00> : vector<37x8xf32>
    %2 = tpu.matmul %0, %1, %cst {dimension_numbers = #tpu.dot_dimension_numbers<[1], [0], [0], [1], [0, 0, 1, 1], [], []>} : vector<37x128xf32>, vector<128x8xf32>, vector<37x8xf32> -> vector<37x8xf32>
    %c0_3 = arith.constant 0 : index
    %c0_4 = arith.constant 0 : index
    %3 = vector.load %arg3[%c0_3, %c0_4] : memref<37x8xf32, #tpu.memory_space<vmem>>, vector<37x8xf32>
    tpu.vector_store %arg3[%c0_3, %c0_4], %2 {strides = array<i32>} : memref<37x8xf32, #tpu.memory_space<vmem>>, vector<37x8xf32>,
    return
  }
  func.func @transform_0(%arg0: i32) -> (i32, i32) {
    %c0_i32 = arith.constant 0 : i32
    %c0_i32_0 = arith.constant 0 : i32
    return %arg0, %c0_i32 : i32, i32
  }
  func.func @transform_1(%arg0: i32) -> (i32, i32) {
    %c0_i32 = arith.constant 0 : i32
    %c0_i32_0 = arith.constant 0 : i32
    %c0_i32_1 = arith.constant 0 : i32
    return %c0_i32, %c0_i32_0 : i32, i32
  }
  func.func @transform_2(%arg0: i32) -> (i32, i32) {
    %c0_i32 = arith.constant 0 : i32
    %c0_i32_0 = arith.constant 0 : i32
    return %arg0, %c0_i32 : i32, i32
  }
}

</mosaic_0001>

<bundles_post_ra>
// kernel: feed_forward_part.1
= control target key start
LH: loop header
LB: loop body
LE: loop exit
PB: predicated region body
PF: predicated region fallthrough
CT: control target
= control target key end

     0   :  { %vm64_vm0 = vcmask 64512   ;;  %vm69_vm1 = vcmask 61440   ;;  %s216_s1 = inlined_call_operand.vmem [shape: f32[128,8], index: 1, kind: input, shape index: {}]   ;;  %s217_s0 = inlined_call_operand.vmem [shape: f32[37,128], index: 0, kind: input, shape index: {}]   ;;  %s218_s2 = inlined_call_operand.vmem [shape: f32[37,8], index: 2, kind: output, shape index: {}]  }
   0x1   :  { %v31_v0 = vld [vmem:[%s216_s1 + $0x78] sm:$0xff]  ;;  %v30_v1 = vld [vmem:[%s216_s1 + $0x70] sm:$0xff]  ;;  %v29_v2 = vld [vmem:[%s216_s1 + $0x68] sm:$0xff] }
   0x2   :  { %77 = vmatpush.msra.mxu3 %v31_v0  ;;  %76 = vmatpush.msra.mxu2 %v31_v0  ;;  %v28_v3 = vld [vmem:[%s216_s1 + $0x60] sm:$0xff]  ;;  %v27_v4 = vld [vmem:[%s216_s1 + $0x58] sm:$0xff]  ;;  %v26_v5 = vld [vmem:[%s216_s1 + $0x50] sm:$0xff] }
   0x3   :  { %32 = vmatpush.msra.mxu0 %v31_v0  ;;  %75 = vmatpush.msra.mxu1 %v31_v0  ;;  %v25_v6 = vld [vmem:[%s216_s1 + $0x48] sm:$0xff]  ;;  %v24_v7 = vld [vmem:[%s216_s1 + $0x40] sm:$0xff]  ;;  %v23_v8 = vld [vmem:[%s216_s1 + $0x38] sm:$0xff] }
   0x4   :  { %80 = vmatpush.msra.mxu3 %v30_v1  ;;  %79 = vmatpush.msra.mxu2 %v30_v1  ;;  %v22_v9 = vld [vmem:[%s216_s1 + $0x30] sm:$0xff]  ;;  %v21_v10 = vld [vmem:[%s216_s1 + $0x28] sm:$0xff]  ;;  %v20_v11 = vld [vmem:[%s216_s1 + $0x20] sm:$0xff] }
   0x5   :  { %33 = vmatpush.msra.mxu0 %v30_v1  ;;  %78 = vmatpush.msra.mxu1 %v30_v1  ;;  %v19_v12 = vld [vmem:[%s216_s1 + $0x18] sm:$0xff]  ;;  %v18_v13 = vld [vmem:[%s216_s1 + $0x10] sm:$0xff]  ;;  %v17_v14 = vld [vmem:[%s216_s1 + $0x8] sm:$0xff] }
   0x6   :  { %83 = vmatpush.msra.mxu3 %v29_v2  ;;  %82 = vmatpush.msra.mxu2 %v29_v2  ;;  %v16_v15 = vld [vmem:[%s216_s1] sm:$0xff]  ;;  %v14_v16 = vld [vmem:[%s217_s0 + $0x18] sm:$0xff]  ;;  %v13_v17 = vld [vmem:[%s217_s0 + $0x10] sm:$0xff] }
   0x7   :  { %34 = vmatpush.msra.mxu0 %v29_v2  ;;  %81 = vmatpush.msra.mxu1 %v29_v2  ;;  %v11_v18 = vld [vmem:[%s217_s0] sm:$0xff]  ;;  %v12_v19 = vld [vmem:[%s217_s0 + $0x8] sm:$0xff] }
   0x8   :  { %86 = vmatpush.msra.mxu3 %v28_v3  ;;  %85 = vmatpush.msra.mxu2 %v28_v3  ;;  %v15_v20 = vld [vmem:[%s217_s0 + $0x20] sm:$0x1f] }
   0x9   :  { %35 = vmatpush.msra.mxu0 %v28_v3  ;;  %84 = vmatpush.msra.mxu1 %v28_v3 }
   0xa   :  { %89 = vmatpush.msra.mxu3 %v27_v4  ;;  %88 = vmatpush.msra.mxu2 %v27_v4 }
   0xb   :  { %36 = vmatpush.msra.mxu0 %v27_v4  ;;  %87 = vmatpush.msra.mxu1 %v27_v4 }
   0xc   :  { %92 = vmatpush.msra.mxu3 %v26_v5  ;;  %91 = vmatpush.msra.mxu2 %v26_v5 }
   0xd   :  { %37 = vmatpush.msra.mxu0 %v26_v5  ;;  %90 = vmatpush.msra.mxu1 %v26_v5 }
   0xe   :  { %95 = vmatpush.msra.mxu3 %v25_v6  ;;  %94 = vmatpush.msra.mxu2 %v25_v6 }
   0xf   :  { %38 = vmatpush.msra.mxu0 %v25_v6  ;;  %93 = vmatpush.msra.mxu1 %v25_v6 }
  0x10   :  { %98 = vmatpush.msra.mxu3 %v24_v7  ;;  %97 = vmatpush.msra.mxu2 %v24_v7 }
  0x11   :  { %39 = vmatpush.msra.mxu0 %v24_v7  ;;  %96 = vmatpush.msra.mxu1 %v24_v7 }
  0x12   :  { %101 = vmatpush.msra.mxu3 %v23_v8  ;;  %100 = vmatpush.msra.mxu2 %v23_v8 }
  0x13   :  { %40 = vmatpush.msra.mxu0 %v23_v8  ;;  %99 = vmatpush.msra.mxu1 %v23_v8 }
  0x14   :  { %104 = vmatpush.msra.mxu3 %v22_v9  ;;  %103 = vmatpush.msra.mxu2 %v22_v9 }
  0x15   :  { %41 = vmatpush.msra.mxu0 %v22_v9  ;;  %102 = vmatpush.msra.mxu1 %v22_v9 }
  0x16   :  { %107 = vmatpush.msra.mxu3 %v21_v10  ;;  %106 = vmatpush.msra.mxu2 %v21_v10 }
  0x17   :  { %42 = vmatpush.msra.mxu0 %v21_v10  ;;  %105 = vmatpush.msra.mxu1 %v21_v10 }
  0x18   :  { %110 = vmatpush.msra.mxu3 %v20_v11  ;;  %109 = vmatpush.msra.mxu2 %v20_v11 }
  0x19   :  { %43 = vmatpush.msra.mxu0 %v20_v11  ;;  %108 = vmatpush.msra.mxu1 %v20_v11 }
  0x1a   :  { %113 = vmatpush.msra.mxu3 %v19_v12  ;;  %112 = vmatpush.msra.mxu2 %v19_v12 }
  0x1b   :  { %44 = vmatpush.msra.mxu0 %v19_v12  ;;  %111 = vmatpush.msra.mxu1 %v19_v12 }
  0x1c   :  { %116 = vmatpush.msra.mxu3 %v18_v13  ;;  %115 = vmatpush.msra.mxu2 %v18_v13 }
  0x1d   :  { %45 = vmatpush.msra.mxu0 %v18_v13  ;;  %114 = vmatpush.msra.mxu1 %v18_v13 }
  0x1e   :  { %119 = vmatpush.msra.mxu3 %v17_v14  ;;  %118 = vmatpush.msra.mxu2 %v17_v14 }
  0x1f   :  { %46 = vmatpush.msra.mxu0 %v17_v14  ;;  %117 = vmatpush.msra.mxu1 %v17_v14 }
  0x20   :  { %122 = vmatpush.msra.mxu3 %v16_v15  ;;  %121 = vmatpush.msra.mxu2 %v16_v15 }
  0x21   :  { %57 = vmatmul.f32.vlgmr.msra.gmra.mxu3 %v14_v16  ;;  %54 = vmatmul.f32.vlgmr.msra.gmra.mxu2 %v13_v17 }
  0x22   :  { %47 = vmatpush.msra.mxu0 %v16_v15  ;;  %120 = vmatpush.msra.mxu1 %v16_v15 }
  0x23   :  { %48 = vmatmul.f32.vlgmr.msra.gmra.mxu0 %v11_v18  ;;  %51 = vmatmul.f32.vlgmr.msra.gmra.mxu1 %v12_v19 }
  0x29   :  { %60 = vmatmul.f32.gmra.mxu3 %v15_v20 }
  0xa0   :  { %v49_v21 = vpop.f32.mrf.mxu0  ;;  %v52_v22 = vpop.f32.mrf.mxu1 }
  0xa1   :  { %65 = vst.msk [vmem:[%s218_s2] sm:$0xff] %vm64_vm0, %v49_v21 }
  0xa2   :  { %66 = vst.msk [vmem:[%s218_s2 + $0x8] sm:$0xff] %vm64_vm0, %v52_v22 }
  0xa4   :  { %v58_v23 = vpop.f32.mrf.mxu3  ;;  %v55_v24 = vpop.f32.mrf.mxu2 }
  0xa5   :  { %68 = vst.msk [vmem:[%s218_s2 + $0x18] sm:$0xff] %vm64_vm0, %v58_v23 }
  0xa6   :  { %67 = vst.msk [vmem:[%s218_s2 + $0x10] sm:$0xff] %vm64_vm0, %v55_v24 }
  0xac   :  { %v61_v25 = vpop.f32.mrf.mxu3 }
  0xad   :  { %70 = vst.msk [vmem:[%s218_s2 + $0x20] sm:$0x1f] %vm69_vm1, %v61_v25 }

</bundles_post_ra>
